<compile_context>
chip_gen: v5e
topology: v5e:2x2
jax: 0.10.0
libtpu: 0.0.40
codegen_flags: <defaults>
</compile_context>

<pallas_src>
import functools
import math

import jax
import jax.numpy as jnp
from jax.experimental import pallas as pl
from jax.experimental.pallas import tpu as pltpu


# --------------------------------------------------------------------------
# Fused kernel.
#   inputs : c_w (B,C), c_i^T/c_j^T/c_w^T (C,B), z_w (B,F),
#            queue_feats (Q,F), queue_probs (Q,C), queue_ptr (1,) in SMEM
#   outputs: loss (1,1), updated queue_feats / queue_probs (aliased to inputs)
#   scratch: (4C, B) stack [c_i^T ; d_j^T ; c_j^T ; d_i^T] for the merged Gram
# --------------------------------------------------------------------------
def _week_loss_kernel(cw_ref, cit_ref, cjt_ref, cwt_ref, zw_ref,
                      qfeat_ref, qprob_ref, ptr_ref,
                      loss_ref, qfeat_out_ref, qprob_out_ref,
                      cstack_ref, *,
                      class_num, temperature, truncated, alpha,
                      use_queue, ptr_is_multiple_of_8):
    cw = cw_ref[...]            # (B, C)
    ci_t = cit_ref[...]         # (C, B)
    cj_t = cjt_ref[...]         # (C, B)
    cw_t = cwt_ref[...]         # (C, B)

    b = cw.shape[0]
    c = class_num
    n = 2 * c
    inv_t = 1.0 / temperature
    log_c = math.log(c)

    # ---- entropy regularizer (ne_loss) -----------------------------------
    def neg_entropy(ct):
        p = jnp.sum(ct, axis=1, keepdims=True)                  # (C, 1)
        p = p / jnp.sum(p)
        return log_c + jnp.sum(p * jnp.log(jnp.maximum(p, 1e-30)),
                               keepdims=True)                   # (1, 1)

    ne_loss = neg_entropy(ci_t) + neg_entropy(cj_t)

    # ---- importance re-weighting ------------------------------------------
    # (B, C) orientation: pseudo-label distribution `probs`
    prob_avg = jnp.sum(cw, axis=0, keepdims=True) * (1.0 / b)   # (1, C)
    w_mean = cw * pl.reciprocal(prob_avg, approx=True)          # (B, C)
    probs = w_mean / jnp.sum(w_mean, axis=1, keepdims=True)     # (B, C)

    # (C, B) orientation: d_i / d_j feed only the contrastive head, so they
    # are built directly in the transposed layout (no in-kernel transposes).
    prob_avg_t = jnp.sum(cw_t, axis=1, keepdims=True) * (1.0 / b)  # (C, 1)
    w_mean_t = cw_t * pl.reciprocal(prob_avg_t, approx=True)       # (C, B)
    d_i_t = ci_t * w_mean_t
    d_i_t = d_i_t * pl.reciprocal(
        jnp.sum(d_i_t, axis=0, keepdims=True), approx=True)        # (C, B)
    d_j_t = cj_t * w_mean_t
    d_j_t = d_j_t * pl.reciprocal(
        jnp.sum(d_j_t, axis=0, keepdims=True), approx=True)        # (C, B)

    # ---- memory-queue smoothing of probs ----------------------------------
    if use_queue:                                   # static python condition
        z = zw_ref[...]                             # (B, F)
        qf = qfeat_ref[...]                         # (Q, F)
        qp = qprob_ref[...]                         # (Q, C)
        logits = jax.lax.dot_general(
            z, qf, (((1,), (1,)), ((), ())),
            preferred_element_type=jnp.float32) * inv_t          # (B, Q)
        lmax = jnp.max(logits, axis=1, keepdims=True)            # overflow-safe
        a = jnp.exp(logits - lmax)
        a = a * pl.reciprocal(jnp.sum(a, axis=1, keepdims=True), approx=True)
        mixed = jnp.dot(a, qp, preferred_element_type=jnp.float32)  # (B, C)
        probs = alpha * probs + (1.0 - alpha) * mixed

    # ---- queue writeback (aliased outputs, only b rows really change) -----
    qfeat_out_ref[...] = qfeat_ref[...]
    qprob_out_ref[...] = qprob_ref[...]
    ptr = ptr_ref[0]
    if ptr_is_multiple_of_8:
        ptr = pl.multiple_of(ptr, 8)
    qfeat_out_ref[pl.ds(ptr, b), :] = zw_ref[...]
    qprob_out_ref[pl.ds(ptr, b), :] = probs

    # ---- truncated weighted pseudo-label loss ------------------------------
    scores = jnp.max(probs, axis=1, keepdims=True)               # (B, 1)
    mask_p = (scores >= truncated).astype(jnp.float32)
    per_row = -jnp.sum(jnp.log(jnp.maximum(cw, 1e-30)) * probs,
                       axis=1, keepdims=True) * mask_p           # (B, 1)
    loss_u = jnp.sum(per_row, keepdims=True) * (1.0 / b)         # (1, 1)

    # ---- cluster-level contrastive loss ------------------------------------
    # Stack [c_i^T ; d_j^T ; c_j^T ; d_i^T] -> (4C, B); one cosine-Gram matmul
    # covers both c1 and c2, the cross (c1,c2) blocks are masked out below.
    cstack_ref[0 * c:1 * c, :] = ci_t
    cstack_ref[1 * c:2 * c, :] = d_j_t
    cstack_ref[2 * c:3 * c, :] = cj_t
    cstack_ref[3 * c:4 * c, :] = d_i_t
    cm = cstack_ref[...]                                         # (4C, B)

    row_sq = jnp.sum(cm * cm, axis=1, keepdims=True)             # (4C, 1)
    inv_norm = jax.lax.rsqrt(jnp.maximum(row_sq, 1e-16))         # EUP
    cm_hat = cm * (inv_norm * math.sqrt(inv_t))                  # fold 1/T
    sim = jax.lax.dot_general(                                   # (4C, 4C) = cos/T
        cm_hat, cm_hat, (((1,), (1,)), ((), ())),
        preferred_element_type=jnp.float32)

    nn = 2 * n
    row = jax.lax.broadcasted_iota(jnp.int32, (nn, nn), 0)
    col = jax.lax.broadcasted_iota(jnp.int32, (nn, nn), 1)
    row_lo = row < n
    col_lo = col < n
    same_half = jnp.logical_or(
        jnp.logical_and(row_lo, col_lo),
        jnp.logical_and(jnp.logical_not(row_lo), jnp.logical_not(col_lo)))
    half_base = jnp.where(row_lo, jnp.zeros_like(row), jnp.full_like(row, n))
    pos_col = half_base + ((row + c) % n)

    pos = jnp.sum(jnp.where(col == pos_col, sim, 0.0),
                  axis=1, keepdims=True)                         # (2N, 1)
    neg = jnp.where(jnp.logical_and(same_half, row != col), sim, -1e30)
    m = jnp.max(neg, axis=1, keepdims=True)
    lse = jnp.log(jnp.sum(jnp.exp(neg - m), axis=1, keepdims=True)) + m
    loss_cluster = jnp.sum(lse - pos, keepdims=True) * (1.0 / (2.0 * n))

    # TODO(synk): the PyTorch module prints loss_u*10 here (host side effect).
    loss_ref[...] = loss_cluster + ne_loss + loss_u * 10.0


# --------------------------------------------------------------------------
# Wrapper: only layout-trivial input transposes + the single fused call.
# --------------------------------------------------------------------------
def week_loss_forward(epoch, step, z_w, c_i, c_j, c_w, queue_feats, queue_probs,
                      queue_ptr, *, class_num, truncated, batch_size,
                      temperature, queue_batch, alpha):
    b, num_cls = c_w.shape
    q, f = queue_feats.shape
    queue_size = batch_size * 5
    use_queue = bool(epoch > 0 or step > queue_batch)   # static python condition

    # tiny input-side transposes (XLA glue on 0.5 KB arrays) so the kernel
    # never has to transpose data internally
    ci_t = jnp.transpose(c_i)
    cj_t = jnp.transpose(c_j)
    cw_t = jnp.transpose(c_w)
    ptr_arr = jnp.asarray([queue_ptr], dtype=jnp.int32)

    ptr_mult8 = (batch_size % 8 == 0 and isinstance(queue_ptr, int)
                 and queue_ptr % 8 == 0)

    vmem = pl.BlockSpec(memory_space=pltpu.MemorySpace.VMEM)
    smem = pl.BlockSpec(memory_space=pltpu.MemorySpace.SMEM)

    kernel = functools.partial(
        _week_loss_kernel,
        class_num=class_num, temperature=temperature, truncated=truncated,
        alpha=alpha, use_queue=use_queue, ptr_is_multiple_of_8=ptr_mult8)

    loss, new_qfeat, new_qprob = pl.pallas_call(
        kernel,
        in_specs=(vmem, vmem, vmem, vmem, vmem, vmem, vmem, smem),
        out_specs=(vmem, vmem, vmem),
        out_shape=(jax.ShapeDtypeStruct((1, 1), jnp.float32),
                   jax.ShapeDtypeStruct((q, f), jnp.float32),
                   jax.ShapeDtypeStruct((q, num_cls), jnp.float32)),
        scratch_shapes=[pltpu.VMEM((4 * class_num, b), jnp.float32)],
        input_output_aliases={5: 1, 6: 2},   # queue buffers updated in place
    )(c_w, ci_t, cj_t, cw_t, z_w, queue_feats, queue_probs, ptr_arr)

    new_ptr = (queue_ptr + b) % queue_size
    return loss[0, 0], new_qfeat, new_qprob, new_ptr


# --------------------------------------------------------------------------
# Pure-JAX reference (mirrors the PyTorch forward) for a sanity check.
# --------------------------------------------------------------------------
def week_loss_ref(epoch, step, z_w, c_i, c_j, c_w, queue_feats, queue_probs,
                  queue_ptr, *, class_num, truncated, batch_size, temperature,
                  queue_batch, alpha):
    hi = jax.lax.Precision.HIGHEST
    c = class_num
    p_i = c_i.sum(0); p_i = p_i / p_i.sum()
    ne_i = math.log(c) + (p_i * jnp.log(p_i)).sum()
    p_j = c_j.sum(0); p_j = p_j / p_j.sum()
    ne_j = math.log(c) + (p_j * jnp.log(p_j)).sum()
    ne_loss = ne_i + ne_j

    prob_avg = c_w.mean(0)
    w_mean = c_w / prob_avg
    d_i = c_i * w_mean; d_i = d_i / d_i.sum(1, keepdims=True)
    d_j = c_j * w_mean; d_j = d_j / d_j.sum(1, keepdims=True)
    probs = w_mean / w_mean.sum(1, keepdims=True)
    if epoch > 0 or step > queue_batch:
        a = jnp.exp(jnp.dot(z_w, queue_feats.T, precision=hi) / temperature)
        a = a / a.sum(1, keepdims=True)
        probs = alpha * probs + (1 - alpha) * jnp.dot(a, queue_probs, precision=hi)

    b = c_w.shape[0]
    queue_feats = queue_feats.at[queue_ptr:queue_ptr + b].set(z_w)
    queue_probs = queue_probs.at[queue_ptr:queue_ptr + b].set(probs)
    new_ptr = (queue_ptr + b) % (batch_size * 5)

    scores = probs.max(1)
    mask_p = (scores >= truncated).astype(jnp.float32)
    loss_u = (-jnp.sum(jnp.log(c_w) * probs, axis=1) * mask_p).mean()

    n = 2 * class_num
    c1 = jnp.concatenate([c_i.T, d_j.T], axis=0)
    c2 = jnp.concatenate([c_j.T, d_i.T], axis=0)

    def ce(cm):
        norm = jnp.linalg.norm(cm, axis=1, keepdims=True)
        sim = jnp.dot(cm, cm.T, precision=hi) / jnp.maximum(norm * norm.T, 1e-8)
        sim = sim / temperature
        pos = jnp.concatenate([jnp.diagonal(sim, class_num),
                               jnp.diagonal(sim, -class_num)])
        sim_nd = jnp.where(jnp.eye(n, dtype=bool), -1e30, sim)
        lse = jax.scipy.special.logsumexp(sim_nd, axis=1)
        return jnp.sum(lse - pos)

    loss_cluster = (ce(c1) + ce(c2)) / (2 * n)
    loss = loss_cluster + ne_loss + loss_u * 10
    return loss, queue_feats, queue_probs, new_ptr


if __name__ == "__main__":
    class_num = 8
    batch_size = 16
    feat_dim = 32
    temperature = 0.5
    truncated = 0.2
    queue_batch = 1
    alpha = 0.9
    queue_size = batch_size * 5

    key = jax.random.PRNGKey(0)
    k1, k2, k3, k4, k5, k6 = jax.random.split(key, 6)
    z_w = jax.random.normal(k1, (batch_size, feat_dim), jnp.float32)
    z_w = z_w / jnp.linalg.norm(z_w, axis=1, keepdims=True)
    c_i = jax.nn.softmax(jax.random.normal(k2, (batch_size, class_num)), axis=1).astype(jnp.float32)
    c_j = jax.nn.softmax(jax.random.normal(k3, (batch_size, class_num)), axis=1).astype(jnp.float32)
    c_w = jax.nn.softmax(jax.random.normal(k4, (batch_size, class_num)), axis=1).astype(jnp.float32)
    queue_feats = jax.random.normal(k5, (queue_size, feat_dim), jnp.float32)
    queue_feats = queue_feats / jnp.linalg.norm(queue_feats, axis=1, keepdims=True)
    queue_probs = jax.nn.softmax(jax.random.normal(k6, (queue_size, class_num)), axis=1).astype(jnp.float32)
    queue_ptr = 0
    epoch, step = 1, 3

    hp = dict(class_num=class_num, truncated=truncated, batch_size=batch_size,
              temperature=temperature, queue_batch=queue_batch, alpha=alpha)

    loss_ref_v, qf_ref, qp_ref, qptr_ref = week_loss_ref(
        epoch, step, z_w, c_i, c_j, c_w, queue_feats, queue_probs, queue_ptr, **hp)

    loss, qf, qp, qptr = week_loss_forward(
        epoch, step, z_w, c_i, c_j, c_w, queue_feats, queue_probs, queue_ptr, **hp)
    jax.block_until_ready((loss, qf, qp))

    assert bool(jnp.isfinite(loss))
    assert jnp.allclose(loss, loss_ref_v, rtol=5e-2, atol=5e-2), (loss, loss_ref_v)
    assert jnp.allclose(qf, qf_ref, rtol=5e-2, atol=5e-2)
    assert jnp.allclose(qp, qp_ref, rtol=5e-2, atol=5e-2)
    assert qptr == qptr_ref
    print("KERNEL_OK")
</pallas_src>

<mosaic_0001>
module attributes {stable_mosaic.version = 11 : i64} {
  func.func @_week_loss_kernel(%arg0: memref<16x8xf32, #tpu.memory_space<vmem>>, %arg1: memref<8x16xf32, #tpu.memory_space<vmem>>, %arg2: memref<8x16xf32, #tpu.memory_space<vmem>>, %arg3: memref<8x16xf32, #tpu.memory_space<vmem>>, %arg4: memref<16x32xf32, #tpu.memory_space<vmem>>, %arg5: memref<80x32xf32, #tpu.memory_space<vmem>>, %arg6: memref<80x8xf32, #tpu.memory_space<vmem>>, %arg7: memref<1xi32, #tpu.memory_space<smem>>, %arg8: memref<1x1xf32, #tpu.memory_space<vmem>>, %arg9: memref<80x32xf32, #tpu.memory_space<vmem>>, %arg10: memref<80x8xf32, #tpu.memory_space<vmem>>, %arg11: memref<32x16xf32, #tpu.memory_space<vmem>>) attributes {dimension_semantics = [], scalar_prefetch = 0 : i64, scratch_operands = 1 : i64, tpu.core_type = #tpu.core_type<tc>} {
    %c0 = arith.constant 0 : index
    %c0_0 = arith.constant 0 : index
    %0 = vector.load %arg0[%c0, %c0_0] : memref<16x8xf32, #tpu.memory_space<vmem>>, vector<16x8xf32>
    %c0_1 = arith.constant 0 : index
    %c0_2 = arith.constant 0 : index
    %1 = vector.load %arg1[%c0_1, %c0_2] : memref<8x16xf32, #tpu.memory_space<vmem>>, vector<8x16xf32>
    %c0_3 = arith.constant 0 : index
    %c0_4 = arith.constant 0 : index
    %2 = vector.load %arg2[%c0_3, %c0_4] : memref<8x16xf32, #tpu.memory_space<vmem>>, vector<8x16xf32>
    %c0_5 = arith.constant 0 : index
    %c0_6 = arith.constant 0 : index
    %3 = vector.load %arg3[%c0_5, %c0_6] : memref<8x16xf32, #tpu.memory_space<vmem>>, vector<8x16xf32>
    %cst = arith.constant dense<0.000000e+00> : vector<8xf32>
    %4 = vector.multi_reduction <add>, %1, %cst [1] : vector<8x16xf32> to vector<8xf32>
    %5 = vector.shape_cast %4 : vector<8xf32> to vector<8x1xf32>
    %6 = vector.shape_cast %5 : vector<8x1xf32> to vector<1x8x1xf32>
    %cst_7 = arith.constant dense<0.000000e+00> : vector<1xf32>
    %7 = vector.multi_reduction <add>, %6, %cst_7 [1, 2] : vector<1x8x1xf32> to vector<1xf32>
    %8 = vector.shape_cast %7 : vector<1xf32> to vector<1x1x1xf32>
    %9 = vector.extract %8[0, 0, 0] : f32 from vector<1x1x1xf32>
    %10 = vector.broadcast %9 : f32 to vector<8x1xf32>
    %11 = arith.divf %5, %10 : vector<8x1xf32>
    %cst_8 = arith.constant 1.000000e-30 : f32
    %12 = vector.broadcast %cst_8 : f32 to vector<8x1xf32>
    %13 = arith.maximumf %11, %12 : vector<8x1xf32>
    %14 = math.log %13 : vector<8x1xf32>
    %15 = arith.mulf %11, %14 : vector<8x1xf32>
    %16 = vector.shape_cast %15 : vector<8x1xf32> to vector<1x8x1xf32>
    %cst_9 = arith.constant dense<0.000000e+00> : vector<1xf32>
    %17 = vector.multi_reduction <add>, %16, %cst_9 [1, 2] : vector<1x8x1xf32> to vector<1xf32>
    %18 = vector.shape_cast %17 : vector<1xf32> to vector<1x1x1xf32>
    %19 = vector.extract %18[0, 0, 0] : f32 from vector<1x1x1xf32>
    %20 = vector.broadcast %19 : f32 to vector<1x1xf32>
    %cst_10 = arith.constant 2.07944155 : f32
    %21 = vector.broadcast %cst_10 : f32 to vector<1x1xf32>
    %22 = arith.addf %21, %20 : vector<1x1xf32>
    %cst_11 = arith.constant dense<0.000000e+00> : vector<8xf32>
    %23 = vector.multi_reduction <add>, %2, %cst_11 [1] : vector<8x16xf32> to vector<8xf32>
    %24 = vector.shape_cast %23 : vector<8xf32> to vector<8x1xf32>
    %25 = vector.shape_cast %24 : vector<8x1xf32> to vector<1x8x1xf32>
    %cst_12 = arith.constant dense<0.000000e+00> : vector<1xf32>
    %26 = vector.multi_reduction <add>, %25, %cst_12 [1, 2] : vector<1x8x1xf32> to vector<1xf32>
    %27 = vector.shape_cast %26 : vector<1xf32> to vector<1x1x1xf32>
    %28 = vector.extract %27[0, 0, 0] : f32 from vector<1x1x1xf32>
    %29 = vector.broadcast %28 : f32 to vector<8x1xf32>
    %30 = arith.divf %24, %29 : vector<8x1xf32>
    %cst_13 = arith.constant 1.000000e-30 : f32
    %31 = vector.broadcast %cst_13 : f32 to vector<8x1xf32>
    %32 = arith.maximumf %30, %31 : vector<8x1xf32>
    %33 = math.log %32 : vector<8x1xf32>
    %34 = arith.mulf %30, %33 : vector<8x1xf32>
    %35 = vector.shape_cast %34 : vector<8x1xf32> to vector<1x8x1xf32>
    %cst_14 = arith.constant dense<0.000000e+00> : vector<1xf32>
    %36 = vector.multi_reduction <add>, %35, %cst_14 [1, 2] : vector<1x8x1xf32> to vector<1xf32>
    %37 = vector.shape_cast %36 : vector<1xf32> to vector<1x1x1xf32>
    %38 = vector.extract %37[0, 0, 0] : f32 from vector<1x1x1xf32>
    %39 = vector.broadcast %38 : f32 to vector<1x1xf32>
    %cst_15 = arith.constant 2.07944155 : f32
    %40 = vector.broadcast %cst_15 : f32 to vector<1x1xf32>
    %41 = arith.addf %40, %39 : vector<1x1xf32>
    %42 = arith.addf %22, %41 : vector<1x1xf32>
    %cst_16 = arith.constant dense<0.000000e+00> : vector<8xf32>
    %43 = vector.multi_reduction <add>, %0, %cst_16 [0] : vector<16x8xf32> to vector<8xf32>
    %44 = vector.shape_cast %43 : vector<8xf32> to vector<1x8xf32>
    %cst_17 = arith.constant 6.250000e-02 : f32
    %45 = vector.broadcast %cst_17 : f32 to vector<1x8xf32>
    %46 = arith.mulf %44, %45 : vector<1x8xf32>
    %47 = tpu.reciprocal %46 {approx = true} : vector<1x8xf32> -> vector<1x8xf32>
    %48 = vector.broadcast %47 : vector<1x8xf32> to vector<16x8xf32>
    %49 = arith.mulf %0, %48 : vector<16x8xf32>
    %cst_18 = arith.constant dense<0.000000e+00> : vector<16xf32>
    %50 = vector.multi_reduction <add>, %49, %cst_18 [1] : vector<16x8xf32> to vector<16xf32>
    %51 = vector.shape_cast %50 : vector<16xf32> to vector<16x1xf32>
    %52 = vector.broadcast %51 : vector<16x1xf32> to vector<16x8xf32>
    %53 = arith.divf %49, %52 : vector<16x8xf32>
    %cst_19 = arith.constant dense<0.000000e+00> : vector<8xf32>
    %54 = vector.multi_reduction <add>, %3, %cst_19 [1] : vector<8x16xf32> to vector<8xf32>
    %55 = vector.shape_cast %54 : vector<8xf32> to vector<8x1xf32>
    %cst_20 = arith.constant 6.250000e-02 : f32
    %56 = vector.broadcast %cst_20 : f32 to vector<8x1xf32>
    %57 = arith.mulf %55, %56 : vector<8x1xf32>
    %58 = tpu.reciprocal %57 {approx = true} : vector<8x1xf32> -> vector<8x1xf32>
    %59 = vector.broadcast %58 : vector<8x1xf32> to vector<8x16xf32>
    %60 = arith.mulf %3, %59 : vector<8x16xf32>
    %61 = arith.mulf %1, %60 : vector<8x16xf32>
    %cst_21 = arith.constant dense<0.000000e+00> : vector<16xf32>
    %62 = vector.multi_reduction <add>, %61, %cst_21 [0] : vector<8x16xf32> to vector<16xf32>
    %63 = vector.shape_cast %62 : vector<16xf32> to vector<1x16xf32>
    %64 = tpu.reciprocal %63 {approx = true} : vector<1x16xf32> -> vector<1x16xf32>
    %65 = vector.broadcast %64 : vector<1x16xf32> to vector<8x16xf32>
    %66 = arith.mulf %61, %65 : vector<8x16xf32>
    %67 = arith.mulf %2, %60 : vector<8x16xf32>
    %cst_22 = arith.constant dense<0.000000e+00> : vector<16xf32>
    %68 = vector.multi_reduction <add>, %67, %cst_22 [0] : vector<8x16xf32> to vector<16xf32>
    %69 = vector.shape_cast %68 : vector<16xf32> to vector<1x16xf32>
    %70 = tpu.reciprocal %69 {approx = true} : vector<1x16xf32> -> vector<1x16xf32>
    %71 = vector.broadcast %70 : vector<1x16xf32> to vector<8x16xf32>
    %72 = arith.mulf %67, %71 : vector<8x16xf32>
    %c0_23 = arith.constant 0 : index
    %c0_24 = arith.constant 0 : index
    %73 = vector.load %arg4[%c0_23, %c0_24] : memref<16x32xf32, #tpu.memory_space<vmem>>, vector<16x32xf32>
    %c0_25 = arith.constant 0 : index
    %c0_26 = arith.constant 0 : index
    %74 = vector.load %arg5[%c0_25, %c0_26] : memref<80x32xf32, #tpu.memory_space<vmem>>, vector<80x32xf32>
    %c0_27 = arith.constant 0 : index
    %c0_28 = arith.constant 0 : index
    %75 = vector.load %arg6[%c0_27, %c0_28] : memref<80x8xf32, #tpu.memory_space<vmem>>, vector<80x8xf32>
    %cst_29 = arith.constant dense<0.000000e+00> : vector<16x80xf32>
    %76 = tpu.matmul %73, %74, %cst_29 {dimension_numbers = #tpu.dot_dimension_numbers<[1], [1], [0], [0], [0, 0, 1, 0], [], []>} : vector<16x32xf32>, vector<80x32xf32>, vector<16x80xf32> -> vector<16x80xf32>
    %cst_30 = arith.constant 2.000000e+00 : f32
    %77 = vector.broadcast %cst_30 : f32 to vector<16x80xf32>
    %78 = arith.mulf %76, %77 : vector<16x80xf32>
    %cst_31 = arith.constant dense<0xFF800000> : vector<16xf32>
    %79 = vector.multi_reduction <maximumf>, %78, %cst_31 [1] : vector<16x80xf32> to vector<16xf32>
    %80 = vector.shape_cast %79 : vector<16xf32> to vector<16x1xf32>
    %81 = vector.broadcast %80 : vector<16x1xf32> to vector<16x80xf32>
    %82 = arith.subf %78, %81 : vector<16x80xf32>
    %83 = math.exp %82 : vector<16x80xf32>
    %cst_32 = arith.constant dense<0.000000e+00> : vector<16xf32>
    %84 = vector.multi_reduction <add>, %83, %cst_32 [1] : vector<16x80xf32> to vector<16xf32>
    %85 = vector.shape_cast %84 : vector<16xf32> to vector<16x1xf32>
    %86 = tpu.reciprocal %85 {approx = true} : vector<16x1xf32> -> vector<16x1xf32>
    %87 = vector.broadcast %86 : vector<16x1xf32> to vector<16x80xf32>
    %88 = arith.mulf %83, %87 : vector<16x80xf32>
    %cst_33 = arith.constant dense<0.000000e+00> : vector<16x8xf32>
    %89 = tpu.matmul %88, %75, %cst_33 {dimension_numbers = #tpu.dot_dimension_numbers<[1], [0], [0], [1], [0, 0, 1, 1], [], []>} : vector<16x80xf32>, vector<80x8xf32>, vector<16x8xf32> -> vector<16x8xf32>
    %cst_34 = arith.constant 0.899999976 : f32
    %90 = vector.broadcast %cst_34 : f32 to vector<16x8xf32>
    %91 = arith.mulf %90, %53 : vector<16x8xf32>
    %cst_35 = arith.constant 1.000000e-01 : f32
    %92 = vector.broadcast %cst_35 : f32 to vector<16x8xf32>
    %93 = arith.mulf %92, %89 : vector<16x8xf32>
    %94 = arith.addf %91, %93 : vector<16x8xf32>
    %c0_36 = arith.constant 0 : index
    %c0_37 = arith.constant 0 : index
    %95 = vector.load %arg5[%c0_36, %c0_37] : memref<80x32xf32, #tpu.memory_space<vmem>>, vector<80x32xf32>
    %c0_38 = arith.constant 0 : index
    %c0_39 = arith.constant 0 : index
    %96 = vector.load %arg9[%c0_38, %c0_39] : memref<80x32xf32, #tpu.memory_space<vmem>>, vector<80x32xf32>
    tpu.vector_store %arg9[%c0_38, %c0_39], %95 {strides = array<i32>} : memref<80x32xf32, #tpu.memory_space<vmem>>, vector<80x32xf32>,
    %c0_40 = arith.constant 0 : index
    %c0_41 = arith.constant 0 : index
    %97 = vector.load %arg6[%c0_40, %c0_41] : memref<80x8xf32, #tpu.memory_space<vmem>>, vector<80x8xf32>
    %c0_42 = arith.constant 0 : index
    %c0_43 = arith.constant 0 : index
    %98 = vector.load %arg10[%c0_42, %c0_43] : memref<80x8xf32, #tpu.memory_space<vmem>>, vector<80x8xf32>
    tpu.vector_store %arg10[%c0_42, %c0_43], %97 {strides = array<i32>} : memref<80x8xf32, #tpu.memory_space<vmem>>, vector<80x8xf32>,
    %c0_44 = arith.constant 0 : index
    %99 = memref.load %arg7[%c0_44] : memref<1xi32, #tpu.memory_space<smem>>
    %100 = tpu.assume_multiple %99, 8 : i32
    %c0_45 = arith.constant 0 : index
    %c0_46 = arith.constant 0 : index
    %101 = vector.load %arg4[%c0_45, %c0_46] : memref<16x32xf32, #tpu.memory_space<vmem>>, vector<16x32xf32>
    %102 = arith.index_cast %100 : i32 to index
    %c0_47 = arith.constant 0 : index
    %103 = vector.load %arg9[%102, %c0_47] : memref<80x32xf32, #tpu.memory_space<vmem>>, vector<16x32xf32>
    tpu.vector_store %arg9[%102, %c0_47], %101 {strides = array<i32>} : memref<80x32xf32, #tpu.memory_space<vmem>>, vector<16x32xf32>,
    %104 = arith.index_cast %100 : i32 to index
    %c0_48 = arith.constant 0 : index
    %105 = vector.load %arg10[%104, %c0_48] : memref<80x8xf32, #tpu.memory_space<vmem>>, vector<16x8xf32>
    tpu.vector_store %arg10[%104, %c0_48], %94 {strides = array<i32>} : memref<80x8xf32, #tpu.memory_space<vmem>>, vector<16x8xf32>,
    %cst_49 = arith.constant dense<0xFF800000> : vector<16xf32>
    %106 = vector.multi_reduction <maximumf>, %94, %cst_49 [1] : vector<16x8xf32> to vector<16xf32>
    %107 = vector.shape_cast %106 : vector<16xf32> to vector<16x1xf32>
    %cst_50 = arith.constant 2.000000e-01 : f32
    %108 = vector.broadcast %cst_50 : f32 to vector<16x1xf32>
    %109 = arith.cmpf oge, %107, %108 : vector<16x1xf32>
    %110 = arith.extui %109 : vector<16x1xi1> to vector<16x1xi32>
    %111 = arith.sitofp %110 : vector<16x1xi32> to vector<16x1xf32>
    %cst_51 = arith.constant 1.000000e-30 : f32
    %112 = vector.broadcast %cst_51 : f32 to vector<16x8xf32>
    %113 = arith.maximumf %0, %112 : vector<16x8xf32>
    %114 = math.log %113 : vector<16x8xf32>
    %115 = arith.mulf %114, %94 : vector<16x8xf32>
    %cst_52 = arith.constant dense<0.000000e+00> : vector<16xf32>
    %116 = vector.multi_reduction <add>, %115, %cst_52 [1] : vector<16x8xf32> to vector<16xf32>
    %117 = vector.shape_cast %116 : vector<16xf32> to vector<16x1xf32>
    %cst_53 = arith.constant 0.000000e+00 : f32
    %118 = vector.broadcast %cst_53 : f32 to vector<16x1xf32>
    %119 = arith.subf %118, %117 : vector<16x1xf32>
    %120 = arith.mulf %119, %111 : vector<16x1xf32>
    %121 = vector.shape_cast %120 : vector<16x1xf32> to vector<1x16x1xf32>
    %cst_54 = arith.constant dense<0.000000e+00> : vector<1xf32>
    %122 = vector.multi_reduction <add>, %121, %cst_54 [1, 2] : vector<1x16x1xf32> to vector<1xf32>
    %123 = vector.shape_cast %122 : vector<1xf32> to vector<1x1x1xf32>
    %124 = vector.extract %123[0, 0, 0] : f32 from vector<1x1x1xf32>
    %125 = vector.broadcast %124 : f32 to vector<1x1xf32>
    %cst_55 = arith.constant 6.250000e-02 : f32
    %126 = vector.broadcast %cst_55 : f32 to vector<1x1xf32>
    %127 = arith.mulf %125, %126 : vector<1x1xf32>
    %c0_56 = arith.constant 0 : index
    %c0_57 = arith.constant 0 : index
    %128 = vector.load %arg11[%c0_56, %c0_57] : memref<32x16xf32, #tpu.memory_space<vmem>>, vector<8x16xf32>
    tpu.vector_store %arg11[%c0_56, %c0_57], %1 {strides = array<i32>} : memref<32x16xf32, #tpu.memory_space<vmem>>, vector<8x16xf32>,
    %c8 = arith.constant 8 : index
    %c0_58 = arith.constant 0 : index
    %129 = vector.load %arg11[%c8, %c0_58] : memref<32x16xf32, #tpu.memory_space<vmem>>, vector<8x16xf32>
    tpu.vector_store %arg11[%c8, %c0_58], %72 {strides = array<i32>} : memref<32x16xf32, #tpu.memory_space<vmem>>, vector<8x16xf32>,
    %c16 = arith.constant 16 : index
    %c0_59 = arith.constant 0 : index
    %130 = vector.load %arg11[%c16, %c0_59] : memref<32x16xf32, #tpu.memory_space<vmem>>, vector<8x16xf32>
    tpu.vector_store %arg11[%c16, %c0_59], %2 {strides = array<i32>} : memref<32x16xf32, #tpu.memory_space<vmem>>, vector<8x16xf32>,
    %c24 = arith.constant 24 : index
    %c0_60 = arith.constant 0 : index
    %131 = vector.load %arg11[%c24, %c0_60] : memref<32x16xf32, #tpu.memory_space<vmem>>, vector<8x16xf32>
    tpu.vector_store %arg11[%c24, %c0_60], %66 {strides = array<i32>} : memref<32x16xf32, #tpu.memory_space<vmem>>, vector<8x16xf32>,
    %c0_61 = arith.constant 0 : index
    %c0_62 = arith.constant 0 : index
    %132 = vector.load %arg11[%c0_61, %c0_62] : memref<32x16xf32, #tpu.memory_space<vmem>>, vector<32x16xf32>
    %133 = arith.mulf %132, %132 : vector<32x16xf32>
    %cst_63 = arith.constant dense<0.000000e+00> : vector<32xf32>
    %134 = vector.multi_reduction <add>, %133, %cst_63 [1] : vector<32x16xf32> to vector<32xf32>
    %135 = vector.shape_cast %134 : vector<32xf32> to vector<32x1xf32>
    %cst_64 = arith.constant 1.000000e-16 : f32
    %136 = vector.broadcast %cst_64 : f32 to vector<32x1xf32>
    %137 = arith.maximumf %135, %136 : vector<32x1xf32>
    %138 = math.rsqrt %137 : vector<32x1xf32>
    %cst_65 = arith.constant 1.41421354 : f32
    %139 = vector.broadcast %cst_65 : f32 to vector<32x1xf32>
    %140 = arith.mulf %138, %139 : vector<32x1xf32>
    %141 = vector.broadcast %140 : vector<32x1xf32> to vector<32x16xf32>
    %142 = arith.mulf %132, %141 : vector<32x16xf32>
    %cst_66 = arith.constant dense<0.000000e+00> : vector<32x32xf32>
    %143 = tpu.matmul %142, %142, %cst_66 {dimension_numbers = #tpu.dot_dimension_numbers<[1], [1], [0], [0], [0, 0, 1, 0], [], []>} : vector<32x16xf32>, vector<32x16xf32>, vector<32x32xf32> -> vector<32x32xf32>
    %144 = tpu.iota {dimensions = array<i32: 0>} : vector<32x32xi32>
    %145 = tpu.iota {dimensions = array<i32: 1>} : vector<32x32xi32>
    %c16_i32 = arith.constant 16 : i32
    %146 = vector.broadcast %c16_i32 : i32 to vector<32x32xi32>
    %147 = arith.cmpi slt, %144, %146 : vector<32x32xi32>
    %c16_i32_67 = arith.constant 16 : i32
    %148 = vector.broadcast %c16_i32_67 : i32 to vector<32x32xi32>
    %149 = arith.cmpi slt, %145, %148 : vector<32x32xi32>
    %150 = arith.andi %147, %149 : vector<32x32xi1>
    %cst_68 = arith.constant dense<true> : vector<32x32xi1>
    %151 = arith.xori %147, %cst_68 : vector<32x32xi1>
    %cst_69 = arith.constant dense<true> : vector<32x32xi1>
    %152 = arith.xori %149, %cst_69 : vector<32x32xi1>
    %153 = arith.andi %151, %152 : vector<32x32xi1>
    %154 = arith.ori %150, %153 : vector<32x32xi1>
    %c0_i32 = arith.constant 0 : i32
    %155 = vector.broadcast %c0_i32 : i32 to vector<32x32xi32>
    %c16_i32_70 = arith.constant 16 : i32
    %156 = vector.broadcast %c16_i32_70 : i32 to vector<32x32xi32>
    %157 = arith.select %147, %155, %156 : vector<32x32xi1>, vector<32x32xi32>
    %c8_i32 = arith.constant 8 : i32
    %158 = vector.broadcast %c8_i32 : i32 to vector<32x32xi32>
    %159 = arith.addi %144, %158 : vector<32x32xi32>
    %c16_i32_71 = arith.constant 16 : i32
    %c0_i32_72 = arith.constant 0 : i32
    %160 = arith.cmpi eq, %c16_i32_71, %c0_i32_72 : i32
    %c1_i32 = arith.constant 1 : i32
    %161 = arith.select %160, %c1_i32, %c16_i32_71 : i32
    %162 = vector.broadcast %161 : i32 to vector<32x32xi32>
    %163 = arith.remsi %159, %162 : vector<32x32xi32>
    %c0_i32_73 = arith.constant 0 : i32
    %164 = vector.broadcast %c0_i32_73 : i32 to vector<32x32xi32>
    %165 = arith.cmpi ne, %163, %164 : vector<32x32xi32>
    %c0_i32_74 = arith.constant 0 : i32
    %166 = vector.broadcast %c0_i32_74 : i32 to vector<32x32xi32>
    %167 = arith.cmpi slt, %163, %166 : vector<32x32xi32>
    %c0_i32_75 = arith.constant 0 : i32
    %168 = arith.cmpi slt, %161, %c0_i32_75 : i32
    %169 = vector.broadcast %168 : i1 to vector<32x32xi1>
    %170 = vector.broadcast %169 : vector<32x32xi1> to vector<32x32xi1>
    %171 = arith.xori %167, %170 : vector<32x32xi1>
    %172 = arith.andi %171, %165 : vector<32x32xi1>
    %173 = vector.broadcast %161 : i32 to vector<32x32xi32>
    %174 = arith.addi %163, %173 : vector<32x32xi32>
    %175 = arith.select %172, %174, %163 : vector<32x32xi1>, vector<32x32xi32>
    %176 = arith.addi %157, %175 : vector<32x32xi32>
    %177 = arith.cmpi eq, %145, %176 : vector<32x32xi32>
    %cst_76 = arith.constant 0.000000e+00 : f32
    %178 = vector.broadcast %cst_76 : f32 to vector<32x32xf32>
    %179 = arith.select %177, %143, %178 : vector<32x32xi1>, vector<32x32xf32>
    %cst_77 = arith.constant dense<0.000000e+00> : vector<32xf32>
    %180 = vector.multi_reduction <add>, %179, %cst_77 [1] : vector<32x32xf32> to vector<32xf32>
    %181 = vector.shape_cast %180 : vector<32xf32> to vector<32x1xf32>
    %182 = arith.cmpi ne, %144, %145 : vector<32x32xi32>
    %183 = arith.andi %154, %182 : vector<32x32xi1>
    %cst_78 = arith.constant -1.000000e+30 : f32
    %184 = vector.broadcast %cst_78 : f32 to vector<32x32xf32>
    %185 = arith.select %183, %143, %184 : vector<32x32xi1>, vector<32x32xf32>
    %cst_79 = arith.constant dense<0xFF800000> : vector<32xf32>
    %186 = vector.multi_reduction <maximumf>, %185, %cst_79 [1] : vector<32x32xf32> to vector<32xf32>
    %187 = vector.shape_cast %186 : vector<32xf32> to vector<32x1xf32>
    %188 = vector.broadcast %187 : vector<32x1xf32> to vector<32x32xf32>
    %189 = arith.subf %185, %188 : vector<32x32xf32>
    %190 = math.exp %189 : vector<32x32xf32>
    %cst_80 = arith.constant dense<0.000000e+00> : vector<32xf32>
    %191 = vector.multi_reduction <add>, %190, %cst_80 [1] : vector<32x32xf32> to vector<32xf32>
    %192 = vector.shape_cast %191 : vector<32xf32> to vector<32x1xf32>
    %193 = math.log %192 : vector<32x1xf32>
    %194 = arith.addf %193, %187 : vector<32x1xf32>
    %195 = arith.subf %194, %181 : vector<32x1xf32>
    %196 = vector.shape_cast %195 : vector<32x1xf32> to vector<1x32x1xf32>
    %cst_81 = arith.constant dense<0.000000e+00> : vector<1xf32>
    %197 = vector.multi_reduction <add>, %196, %cst_81 [1, 2] : vector<1x32x1xf32> to vector<1xf32>
    %198 = vector.shape_cast %197 : vector<1xf32> to vector<1x1x1xf32>
    %199 = vector.extract %198[0, 0, 0] : f32 from vector<1x1x1xf32>
    %200 = vector.broadcast %199 : f32 to vector<1x1xf32>
    %cst_82 = arith.constant 3.125000e-02 : f32
    %201 = vector.broadcast %cst_82 : f32 to vector<1x1xf32>
    %202 = arith.mulf %200, %201 : vector<1x1xf32>
    %203 = arith.addf %202, %42 : vector<1x1xf32>
    %cst_83 = arith.constant 1.000000e+01 : f32
    %204 = vector.broadcast %cst_83 : f32 to vector<1x1xf32>
    %205 = arith.mulf %127, %204 : vector<1x1xf32>
    %206 = arith.addf %203, %205 : vector<1x1xf32>
    %c0_84 = arith.constant 0 : index
    %c0_85 = arith.constant 0 : index
    %207 = vector.load %arg8[%c0_84, %c0_85] : memref<1x1xf32, #tpu.memory_space<vmem>>, vector<1x1xf32>
    tpu.vector_store %arg8[%c0_84, %c0_85], %206 {strides = array<i32>} : memref<1x1xf32, #tpu.memory_space<vmem>>, vector<1x1xf32>,
    return
  }
}

</mosaic_0001>

<bundles_post_ra>
// kernel: tpu_custom_call.1
= control target key start
LH: loop header
LB: loop body
LE: loop exit
PB: predicated region body
PF: predicated region fallthrough
CT: control target
= control target key end

     0   :  { %vm230_vm0 = vcmask 261120   ;;  %vm39_vm1 = vcmask 130048   ;;  %s1357_s0 = inlined_call_operand.vmem [shape: f32[16,8], index: 0, kind: input, shape index: {}]   ;;  %s1358_s1 = inlined_call_operand.vmem [shape: f32[8,16], index: 1, kind: input, shape index: {}]   ;;  %s1359_s2 = inlined_call_operand.vmem [shape: f32[8,16], index: 2, kind: input, shape index: {}]   ;;  %s1360_s3 = inlined_call_operand.vmem [shape: f32[8,16], index: 3, kind: input, shape index: {}]   ;;  %s1361_s4 = inlined_call_operand.vmem [shape: f32[16,32], index: 4, kind: input, shape index: {}]   ;;  %s1362_s5 = inlined_call_operand.vmem [shape: f32[80,32], index: 5, kind: input, shape index: {}, may-alias: {5,9}]   ;;  %s1363_s6 = inlined_call_operand.vmem [shape: f32[80,8], index: 6, kind: input, shape index: {}, may-alias: {6,10}]   ;;  %s1364_s7 = inlined_call_operand.<no memory space> [shape: s32[1], index: 7, kind: input, shape index: {}]   ;;  %s1365_s8 = inlined_call_operand.hbm [shape: f32[1,1], index: 8, kind: output, shape index: {0}]   ;;  %s1366_s9 = inlined_call_operand.vmem [shape: f32[80,32], index: 9, kind: output, shape index: {1}, may-alias: {5,9}]   ;;  %s1367_s10 = inlined_call_operand.vmem [shape: f32[80,8], index: 10, kind: output, shape index: {2}, may-alias: {6,10}]  }
   0x1   :  { %v219_v0 = vld [vmem:[%s1362_s5 + $0x48] sm:$0xff]  ;;  %v966_v1 = vld [vmem:[%s1360_s3] sm:$0xff] }
   0x2   :  { %795 = vmatpush.xpose.msk.msra.mxu3 %vm230_vm0, %v219_v0  ;;  %359 = vst.msk [vmem:[%s1366_s9 + $0x48] sm:$0xff] %vm230_vm0, %v219_v0  ;;  %v182_v2 = vsel %vm39_vm1, %v966_v1, 0.0  ;;  %771 = vmatpush.xpose.msk.msra.mxu0 %vm230_vm0, %v219_v0  ;;  %v982_v4 = vld [vmem:[%s1358_s1] sm:$0xff] }
   0x3   :  { %183 = vadd.xlane.f32.xlu0 %v182_v2  ;;  %433 = vst.msk [vmem:[#allocation2] sm:$0xff] %vm39_vm1, %v982_v4 }
   0x9   :  { %v218_v3 = vld [vmem:[%s1362_s5 + $0x40] sm:$0xff] }
   0xa   :  { %358 = vst.msk [vmem:[%s1366_s9 + $0x40] sm:$0xff] %vm230_vm0, %v218_v3 }
  0x11   :  { %v217_v5 = vld [vmem:[%s1362_s5 + $0x38] sm:$0xff] }
  0x12   :  { %357 = vst.msk [vmem:[%s1366_s9 + $0x38] sm:$0xff] %vm230_vm0, %v217_v5 }
  0x19   :  { %v216_v6 = vld [vmem:[%s1362_s5 + $0x30] sm:$0xff] }
  0x1a   :  { %17 = vsyncpa [#allocation5], 0  ;;  %796 = vmatpush.xpose.msk.msra.mxu3 %vm230_vm0, %v218_v3  ;;  %772 = vmatpush.xpose.msk.msra.mxu0 %vm230_vm0, %v218_v3  ;;  %356 = vst.msk [vmem:[%s1366_s9 + $0x30] sm:$0xff] %vm230_vm0, %v216_v6  ;;  %s383_s11 = scalar_lea.vmem %s1366_s9, %s1364_s7  ;;  %v1052_v13 = vld [vmem:[#allocation2] sm:$0xff]  ;;  %v382_v16 = vld [vmem:[%s1361_s4 + $0x8] sm:$0xff]  ;;  %v40_v18 = vsel %vm39_vm1, %v982_v4, 0.0  ;;  %s386_s19 = scalar_lea.vmem %s1367_s10, %s1364_s7 }
  0x1b   :  { %v381_v14 = vld [vmem:[%s1361_s4] sm:$0xff]  ;;  %v441_v15 = vmul.f32 %v1052_v13, %v1052_v13  ;;  %vm43_vm2 = vcmask 7168   ;;  %vm292_vm3 = vcmask 654336   ;;  %s752_s3 = sshll.u32 %s1365_s8, 4  ;;  %s753_s3 = int_to_ptr.hbm [resolvable:$true] %s752_s3 }
  0x1c   :  { %v37_v19 = vld [vmem:[%s1359_s2] sm:$0xff] }
  0x1d   :  { %v445_v17 = vsel %vm39_vm1, %v441_v15, 0.0  ;;  %435 = vst.msk [vmem:[#allocation2 + $0x10] sm:$0xff] %vm39_vm1, %v37_v19  ;;  %v86_v46 = vsel %vm39_vm1, %v37_v19, 0.0 }
  0x1e   :  { %797 = vmatpush.xpose.msk.msra.mxu3 %vm230_vm0, %v217_v5  ;;  %773 = vmatpush.xpose.msk.msra.mxu0 %vm230_vm0, %v217_v5 }
  0x1f   :  { %446 = vadd.xlane.f32.xlu2 %v445_v17 }
  0x21   :  { %v215_v7 = vld [vmem:[%s1362_s5 + $0x28] sm:$0xff] }
  0x22   :  { %355 = vst.msk [vmem:[%s1366_s9 + $0x28] sm:$0xff] %vm230_vm0, %v215_v7  ;;  %798 = vmatpush.xpose.msk.msra.mxu3 %vm230_vm0, %v216_v6  ;;  %774 = vmatpush.xpose.msk.msra.mxu0 %vm230_vm0, %v216_v6 }
  0x24   :  { %v1091_v20 = vld [vmem:[#allocation2 + $0x10] sm:$0xff] }
  0x25   :  { %v443_v22 = vmul.f32 %v1091_v20, %v1091_v20 }
  0x26   :  { %799 = vmatpush.xpose.msk.msra.mxu3 %vm230_vm0, %v215_v7  ;;  %775 = vmatpush.xpose.msk.msra.mxu0 %vm230_vm0, %v215_v7 }
  0x27   :  { %41 = vadd.xlane.f32.xlu2 %v40_v18  ;;  %v451_v24 = vsel %vm39_vm1, %v443_v22, 0.0 }
  0x28   :  { %452 = vadd.xlane.f32.xlu1 %v451_v24 }
  0x29   :  { %v214_v8 = vld [vmem:[%s1362_s5 + $0x20] sm:$0xff] }
  0x2a   :  { %354 = vst.msk [vmem:[%s1366_s9 + $0x20] sm:$0xff] %vm230_vm0, %v214_v8  ;;  %800 = vmatpush.xpose.msk.msra.mxu3 %vm230_vm0, %v214_v8  ;;  %776 = vmatpush.xpose.msk.msra.mxu0 %vm230_vm0, %v214_v8 }
  0x31   :  { %v213_v9 = vld [vmem:[%s1362_s5 + $0x18] sm:$0xff] }
  0x32   :  { %353 = vst.msk [vmem:[%s1366_s9 + $0x18] sm:$0xff] %vm230_vm0, %v213_v9  ;;  %801 = vmatpush.xpose.msk.msra.mxu3 %vm230_vm0, %v213_v9  ;;  %777 = vmatpush.xpose.msk.msra.mxu0 %vm230_vm0, %v213_v9 }
  0x39   :  { %v212_v10 = vld [vmem:[%s1362_s5 + $0x10] sm:$0xff] }
  0x3a   :  { %352 = vst.msk [vmem:[%s1366_s9 + $0x10] sm:$0xff] %vm230_vm0, %v212_v10  ;;  %802 = vmatpush.xpose.msk.msra.mxu3 %vm230_vm0, %v212_v10  ;;  %778 = vmatpush.xpose.msk.msra.mxu0 %vm230_vm0, %v212_v10 }
  0x41   :  { %v211_v11 = vld [vmem:[%s1362_s5 + $0x8] sm:$0xff] }
  0x42   :  { %351 = vst.msk [vmem:[%s1366_s9 + $0x8] sm:$0xff] %vm230_vm0, %v211_v11  ;;  %803 = vmatpush.xpose.msk.msra.mxu3 %vm230_vm0, %v211_v11  ;;  %779 = vmatpush.xpose.msk.msra.mxu0 %vm230_vm0, %v211_v11 }
  0x49   :  { %v210_v12 = vld [vmem:[%s1362_s5] sm:$0xff]  ;;  %s904_s5 = smov [#allocation4]  }
  0x4a   :  { %350 = vst.msk [vmem:[%s1366_s9] sm:$0xff] %vm230_vm0, %v210_v12  ;;  %804 = vmatpush.xpose.msk.msra.mxu3 %vm230_vm0, %v210_v12  ;;  %780 = vmatpush.xpose.msk.msra.mxu0 %vm230_vm0, %v210_v12 }
  0x4b   :  { %384 = vst.msk [vmem:[%s383_s11] sm:$0xff] %vm230_vm0, %v381_v14 }
  0x4c   :  { %385 = vst.msk [vmem:[%s383_s11 + $0x8] sm:$0xff] %vm230_vm0, %v382_v16 }
  0x4d   :  { %782 = vmatmul.msk.f32.vlgmr.msra.gmra.mxu3 %vm230_vm0, %v382_v16  ;;  %781 = vmatmul.msk.f32.vlgmr.msra.gmra.mxu0 %vm230_vm0, %v381_v14 }
  0x76   :  { %v184_v21 = vpop.xlane.xlu0 %183 }
  0x77   :  { %v185_v23 = vmul.f32 0.0625, %v184_v21 }
  0x79   :  { %820 = vrcp.f32 %v185_v23 }
  0x7f   :  { %v821_v25 = vpop.eup %820 }
  0x80   :  { %v187_v26 = vmul.f32 %v821_v25, %v966_v1 }
  0x82   :  { %v188_v27 = vmul.f32 %v187_v26, %v982_v4  ;;  %v198_v28 = vmul.f32 %v187_v26, %v37_v19 }
  0x84   :  { %v189_v30 = vsel %vm39_vm1, %v188_v27, 0.0  ;;  %v199_v31 = vsel %vm39_vm1, %v198_v28, 0.0 }
  0x85   :  { %v190_v32 = vrot.slane %v189_v30, 4  ;;  %v200_v33 = vrot.slane %v199_v31, 4 }
  0x87   :  { %v191_v34 = vadd.f32 %v190_v32, %v189_v30  ;;  %v201_v35 = vadd.f32 %v200_v33, %v199_v31 }
  0x89   :  { %v192_v36 = vrot.slane %v191_v34, 2  ;;  %v202_v37 = vrot.slane %v201_v35, 2 }
  0x8b   :  { %v193_v38 = vadd.f32 %v192_v36, %v191_v34  ;;  %v203_v39 = vadd.f32 %v202_v37, %v201_v35 }
  0x8d   :  { %v194_v42 = vrot.slane %v193_v38, 1  ;;  %v204_v43 = vrot.slane %v203_v39, 1 }
  0x8f   :  { %v195_v44 = vadd.f32 %v194_v42, %v193_v38  ;;  %v205_v45 = vadd.f32 %v204_v43, %v203_v39 }
  0x91   :  { %822 = vrcp.f32 %v195_v44 }
  0x92   :  { %v447_v29 = vpop.xlane.xlu2 %446  ;;  %824 = vrcp.f32 %v205_v45 }
  0x93   :  { %v1119_v8 = vmax.f32 %v447_v29, 1e-16 }
  0x95   :  { %vm467_vm11 = vweird.f32 %v1119_v8 }
  0x97   :  { %v823_v47 = vpop.eup %822 }
  0x98   :  { %v825_v48 = vpop.eup %824  ;;  %v197_v49 = vmul.f32 %v823_v47, %v188_v27 }
  0x99   :  { %v207_v50 = vmul.f32 %v825_v48, %v198_v28 }
  0x9a   :  { %v1100_v40 = vpop.xlane.xlu2 %41  ;;  %436 = vst.msk [vmem:[#allocation2 + $0x18] sm:$0xff] %vm39_vm1, %v197_v49 }
  0x9b   :  { %v44_v41 = vsel %vm43_vm2, %v1100_v40, 0.0  ;;  %434 = vst.msk [vmem:[#allocation2 + $0x8] sm:$0xff] %vm39_vm1, %v207_v50  ;;  %v453_v3 = vpop.xlane.xlu1 %452 }
  0x9c   :  { %45 = vadd.xlane.f32.xlu2 %v44_v41  ;;  %v459_v6 = vmax.f32 %v453_v3, 1e-16 }
  0x9e   :  { %826 = vrsqrt.f32 %v459_v6  ;;  %vm487_vm4 = vweird.f32 %v459_v6 }
  0x9f   :  { %828 = vrsqrt.f32 %v1119_v8 }
  0xa1   :  { %v1107_v51 = vld [vmem:[#allocation2 + $0x18] sm:$0xff] }
  0xa2   :  { %v1109_v52 = vld [vmem:[#allocation2 + $0x8] sm:$0xff]  ;;  %v444_v53 = vmul.f32 %v1107_v51, %v1107_v51 }
  0xa3   :  { %v442_v54 = vmul.f32 %v1109_v52, %v1109_v52 }
  0xa4   :  { %87 = vadd.xlane.f32.xlu2 %v86_v46  ;;  %v454_v55 = vsel %vm39_vm1, %v444_v53, 0.0  ;;  %v827_v9 = vpop.eup %826 }
  0xa5   :  { %v448_v56 = vsel %vm39_vm1, %v442_v54, 0.0  ;;  %455 = vadd.xlane.f32.xlu0 %v454_v55  ;;  %v482_v10 = vmul.f32 %v827_v9, %v459_v6  ;;  %v829_v17 = vpop.eup %828  ;;  %vm488_vm5 = vweird.f32 %v827_v9 }
  0xa6   :  { %449 = vadd.xlane.f32.xlu1 %v448_v56  ;;  %v462_v18 = vmul.f32 %v829_v17, %v1119_v8  ;;  %vm1123_vm6 = vmor %vm487_vm4, %vm488_vm5  ;;  %vm468_vm12 = vweird.f32 %v829_v17  ;;  %vm132_vm4 = vcmask 64512  }
  0xa7   :  { %v483_v16 = vmul.f32 %v827_v9, %v482_v10  ;;  %vm469_vm15 = vmor %vm467_vm11, %vm468_vm12 }
  0xa8   :  { %v463_v26 = vmul.f32 %v829_v17, %v462_v18 }
  0xa9   :  { %v484_v19 = vmul.f32 0.5, %v483_v16 }
  0xaa   :  { %v464_v36 = vmul.f32 0.5, %v463_v26 }
  0xab   :  { %v485_v27 = vsub.f32 1.5, %v484_v19 }
  0xac   :  { %v465_v45 = vsub.f32 1.5, %v464_v36 }
  0xad   :  { %v486_v37 = vmul.f32 %v827_v9, %v485_v27 }
  0xaf   :  { %v490_v46 = vsel %vm1123_vm6, %v827_v9, %v486_v37 }
  0xb0   :  { %v503_v56 = vmul.f32 1.4142135, %v490_v46 }
  0xca   :  { %v284_v57 = vpop.f32.mrf.mxu0 }
  0xcb   :  { %v290_v58 = vmul.f32 2.0, %v284_v57  ;;  %v466_v57 = vmul.f32 %v829_v17, %v465_v45 }
  0xcd   :  { %v293_v59 = vsel %vm292_vm3, %v290_v58, -inf }
  0xce   :  { %294 = vmax.xlane.f32.xlu0 %v293_v59  ;;  %v507_v59 = vmul.f32 %v503_v56, %v1091_v20 }
  0xd0   :  { %v287_v60 = vpop.f32.mrf.mxu3 }
  0xd1   :  { %v291_v61 = vmul.f32 2.0, %v287_v60 }
  0xd3   :  { %v296_v62 = vsel %vm292_vm3, %v291_v61, -inf }
  0xd4   :  { %297 = vmax.xlane.f32.xlu1 %v296_v62 }
 0x10f   :  { %v46_v63 = vpop.xlane.xlu2 %45 }
 0x110   :  { %v47_v0 = vrot.slane %v46_v63, 4 }
 0x112   :  { %v48_v1 = vadd.f32 %v47_v0, %v46_v63 }
 0x114   :  { %v49_v2 = vrot.slane %v48_v1, 2 }
 0x116   :  { %v50_v4 = vadd.f32 %v49_v2, %v48_v1 }
 0x117   :  { %v1146_v0 = vpop.xlane.xlu2 %87 }
 0x118   :  { %v51_v5 = vrot.slane %v50_v4, 1  ;;  %v456_v11 = vpop.xlane.xlu0 %455  ;;  %v89_v20 = vsel %vm43_vm2, %v1146_v0, 0.0 }
 0x119   :  { %v450_v12 = vpop.xlane.xlu1 %449  ;;  %v460_v14 = vmax.f32 %v456_v11, 1e-16 }
 0x11a   :  { %v52_v7 = vadd.f32 %v51_v5, %v50_v4  ;;  %v458_v15 = vmax.f32 %v450_v12, 1e-16 }
 0x11b   :  { %830 = vrsqrt.f32 %v460_v14  ;;  %vm497_vm8 = vweird.f32 %v460_v14 }
 0x11c   :  { %805 = vpush %v52_v7  ;;  %832 = vrsqrt.f32 %v458_v15  ;;  %vm477_vm13 = vweird.f32 %v458_v15 }
 0x121   :  { %v831_v22 = vpop.eup %830 }
 0x122   :  { %v833_v24 = vpop.eup %832  ;;  %v492_v25 = vmul.f32 %v831_v22, %v460_v14  ;;  %vm498_vm7 = vweird.f32 %v831_v22 }
 0x123   :  { %v472_v28 = vmul.f32 %v833_v24, %v458_v15  ;;  %vm499_vm9 = vmor %vm497_vm8, %vm498_vm7  ;;  %vm478_vm10 = vweird.f32 %v833_v24 }
 0x124   :  { %v493_v31 = vmul.f32 %v831_v22, %v492_v25  ;;  %vm479_vm14 = vmor %vm477_vm13, %vm478_vm10 }
 0x125   :  { %v473_v33 = vmul.f32 %v833_v24, %v472_v28 }
 0x126   :  { %v494_v34 = vmul.f32 0.5, %v493_v31 }
 0x127   :  { %v474_v38 = vmul.f32 0.5, %v473_v33 }
 0x128   :  { %v495_v41 = vsub.f32 1.5, %v494_v34 }
 0x129   :  { %v475_v42 = vsub.f32 1.5, %v474_v38 }
 0x12a   :  { %v496_v43 = vmul.f32 %v831_v22, %v495_v41 }
 0x12b   :  { %v476_v47 = vmul.f32 %v833_v24, %v475_v42 }
 0x12c   :  { %v500_v49 = vsel %vm499_vm9, %v831_v22, %v496_v43 }
 0x12d   :  { %v504_v50 = vmul.f32 1.4142135, %v500_v49 }
 0x12f   :  { %v508_v55 = vmul.f32 %v504_v50, %v1107_v51  ;;  %v550_v50 = vlaneseq }
 0x131   :  { %787 = vmatpush.xpose.msk.msra.mxu2 %vm39_vm1, %v508_v55 }
 0x135   :  { %788 = vmatpush.xpose.msk.msra.mxu2 %vm39_vm1, %v507_v59 }
 0x141   :  { %v295_v21 = vpop.xlane.xlu0 %294 }
 0x142   :  { %v299_v23 = vsub.f32 %v290_v58, %v295_v21  ;;  %v480_v58 = vsel %vm479_vm14, %v833_v24, %v476_v47  ;;  %v1199_v24 = vld [vmem:[%s1357_s0 + $0x8] sm:$0xff]  ;;  %vm902_vm14 = vmmov 1  }
 0x143   :  { %v502_v60 = vmul.f32 1.4142135, %v480_v58  ;;  %v134_v25 = vsel %vm132_vm4, %v1199_v24, 0.0 }
 0x144   :  { %v301_v29 = vmul.f32 1.442695, %v299_v23  ;;  %v1194_v23 = vld [vmem:[%s1357_s0] sm:$0xff] }
 0x145   :  { %v506_v62 = vmul.f32 %v502_v60, %v1109_v52  ;;  %v229_v52 = vld [vmem:[%s1363_s6 + $0x48] sm:$0xff]  ;;  %v556_v60 = vand.u32 127, %v550_v50 }
 0x146   :  { %834 = vpow2.f32 %v301_v29  ;;  %327 = vmatpush.msra.mxu1 %v229_v52 }
 0x147   :  { %v298_v30 = vpop.xlane.xlu1 %297  ;;  %789 = vmatpush.xpose.msk.msra.mxu2 %vm39_vm1, %v506_v62  ;;  %vm561_vm9 = vcmp.lt.s32.totalorder %v556_v60, 16 }
 0x148   :  { %v300_v32 = vsub.f32 %v291_v61, %v298_v30  ;;  %v470_v61 = vsel %vm469_vm15, %v829_v17, %v466_v57  ;;  %vm1265_vm15 = vmxor %vm561_vm9, %vm902_vm14 }
 0x149   :  { %v501_v63 = vmul.f32 1.4142135, %v470_v61 }
 0x14a   :  { %v303_v35 = vmul.f32 1.442695, %v300_v32 }
 0x14b   :  { %v505_v51 = vmul.f32 %v501_v63, %v1052_v13  ;;  %v228_v13 = vld [vmem:[%s1363_s6 + $0x40] sm:$0xff] }
 0x14c   :  { %836 = vpow2.f32 %v303_v35  ;;  %v1127_v44 = vpop.eup %834  ;;  %379 = vst.msk [vmem:[%s1367_s10 + $0x48] sm:$0xff] %vm132_vm4, %v229_v52  ;;  %328 = vmatpush.msra.mxu1 %v228_v13 }
 0x14d   :  { %v305_v48 = vsel %vm292_vm3, %v1127_v44, 0.0  ;;  %790 = vmatpush.xpose.msk.msra.mxu2 %vm39_vm1, %v505_v51  ;;  %s806_s2 = spop %805  ;;  %378 = vst.msk [vmem:[%s1367_s10 + $0x40] sm:$0xff] %vm132_vm4, %v228_v13 }
 0x14e   :  { %306 = vadd.xlane.f32.xlu0 %v305_v48  ;;  %v54_v1 = vstv %s806_s2  ;;  %s750_s2 = sshll.u32 %s904_s5, 4  ;;  %s751_s2 = int_to_ptr.vmem [resolvable:$true] %s750_s2 }
 0x14f   :  { %838 = vrcp.f32 %v54_v1  ;;  %v66_v7 = vand.u32 2147483648, %v54_v1  ;;  %vm60_vm5 = vweird.f32 %v54_v1  ;;  %v64_v9 = vand.u32 2147483647, %v54_v1 }
 0x150   :  { %791 = vmatmul.msk.f32.vlgmr.msra.gmra.mxu2 %vm39_vm1, %v505_v51 }
 0x151   :  { %v67_v11 = vor.u32 1.1754944e-38, %v66_v7  ;;  %vm65_vm8 = vcmp.eq.f32.partialorder %v64_v9, 8.507059e+37 }
 0x152   :  { %v1133_v53 = vpop.eup %836 }
 0x153   :  { %v308_v54 = vsel %vm292_vm3, %v1133_v53, 0.0 }
 0x154   :  { %309 = vadd.xlane.f32.xlu1 %v308_v54  ;;  %v227_v2 = vld [vmem:[%s1363_s6 + $0x38] sm:$0xff]  ;;  %v551_v54 = vshrl.u32 %v550_v50, 7 }
 0x155   :  { %377 = vst.msk [vmem:[%s1367_s10 + $0x38] sm:$0xff] %vm132_vm4, %v227_v2  ;;  %v839_v5 = vpop.eup %838  ;;  %329 = vmatpush.msra.mxu1 %v227_v2 }
 0x156   :  { %v56_v6 = vmul.f32 %v839_v5, %v54_v1  ;;  %vm61_vm6 = vweird.f32 %v839_v5  ;;  %v553_v56 = vadd.s32 16, %v551_v54  ;;  %vm658_vm10 = vcmp.ne.s32.totalorder %v551_v54, %v556_v60 }
 0x157   :  { %vm62_vm7 = vmor %vm60_vm5, %vm61_vm6 }
 0x158   :  { %792 = vmatmul.msk.f32.gmra.mxu2 %vm39_vm1, %v506_v62  ;;  %v57_v8 = vsub.f32 1.0, %v56_v6  ;;  %v584_v58 = vadd.s32 8, %v553_v56  ;;  %v554_v62 = vadd.s32 24, %v551_v54  ;;  %vm662_vm12 = vmand %vm561_vm9, %vm658_vm10  ;;  %vm660_vm5 = vcmp.ne.s32.totalorder %v553_v56, %v556_v60 }
 0x159   :  { %vm664_vm6 = vmand %vm1265_vm15, %vm660_vm5 }
 0x15a   :  { %v58_v10 = vmul.f32 %v839_v5, %v57_v8  ;;  %v585_v63 = vadd.s32 8, %v554_v62 }
 0x15c   :  { %90 = vadd.xlane.f32.xlu1 %v89_v20  ;;  %v226_v3 = vld [vmem:[%s1363_s6 + $0x30] sm:$0xff]  ;;  %v59_v12 = vadd.f32 %v839_v5, %v58_v10  ;;  %v611_v51 = vand.u32 15, %v585_v63 }
 0x15d   :  { %376 = vst.msk [vmem:[%s1367_s10 + $0x30] sm:$0xff] %vm132_vm4, %v226_v3  ;;  %330 = vmatpush.msra.mxu1 %v226_v3 }
 0x15e   :  { %v63_v14 = vsel %vm62_vm7, %v839_v5, %v59_v12  ;;  %v637_v1 = vadd.s32 16, %v611_v51  ;;  %vm661_vm7 = vcmp.ne.s32.totalorder %v554_v62, %v556_v60 }
 0x15f   :  { %v68_v15 = vsel %vm65_vm8, %v67_v11, %v63_v14 }
 0x160   :  { %793 = vmatmul.msk.f32.gmra.mxu2 %vm39_vm1, %v507_v59  ;;  %v69_v16 = vmul.f32 %v68_v15, %v1100_v40  ;;  %v133_v40 = vsel %vm132_vm4, %v1194_v23, 0.0  ;;  %v604_v59 = vand.u32 15, %v584_v58  ;;  %vm641_vm11 = vcmp.eq.s32.totalorder %v556_v60, %v637_v1 }
 0x161   :  { %v135_v26 = vadd.f32 %v134_v25, %v133_v40 }
 0x162   :  { %v70_v17 = vmax.f32 %v69_v16, 1e-30  ;;  %v636_v61 = vadd.s32 16, %v604_v59 }
 0x163   :  { %v136_v27 = vrot.slane %v135_v26, 4 }
 0x164   :  { %v225_v4 = vld [vmem:[%s1363_s6 + $0x28] sm:$0xff]  ;;  %840 = vlog2.f32 %v70_v17 }
 0x165   :  { %375 = vst.msk [vmem:[%s1367_s10 + $0x28] sm:$0xff] %vm132_vm4, %v225_v4  ;;  %331 = vmatpush.msra.mxu1 %v225_v4  ;;  %v137_v28 = vadd.f32 %v136_v27, %v135_v26 }
 0x167   :  { %v138_v29 = vrot.slane %v137_v28, 2 }
 0x168   :  { %794 = vmatmul.msk.f32.gmra.mxu2 %vm39_vm1, %v508_v55  ;;  %vm640_vm1 = vcmp.eq.s32.totalorder %v556_v60, %v636_v61 }
 0x169   :  { %v139_v30 = vadd.f32 %v138_v29, %v137_v28 }
 0x16a   :  { %v841_v18 = vpop.eup %840 }
 0x16b   :  { %v72_v19 = vmul.f32 0.6931472, %v841_v18  ;;  %v140_v31 = vrot.slane %v139_v30, 1 }
 0x16c   :  { %v224_v35 = vld [vmem:[%s1363_s6 + $0x20] sm:$0xff]  ;;  %v223_v37 = vld [vmem:[%s1363_s6 + $0x18] sm:$0xff] }
 0x16d   :  { %v73_v21 = vmul.f32 %v72_v19, %v69_v16  ;;  %v141_v32 = vadd.f32 %v140_v31, %v139_v30  ;;  %332 = vmatpush.msra.mxu1 %v224_v35  ;;  %374 = vst.msk [vmem:[%s1367_s10 + $0x20] sm:$0xff] %vm132_vm4, %v224_v35 }
 0x16e   :  { %373 = vst.msk [vmem:[%s1367_s10 + $0x18] sm:$0xff] %vm132_vm4, %v223_v37 }
 0x16f   :  { %v74_v22 = vsel %vm43_vm2, %v73_v21, 0.0  ;;  %v142_v33 = vmul.f32 0.0625, %v141_v32  ;;  %333 = vmatpush.msra.mxu1 %v223_v37 }
 0x170   :  { %75 = vadd.xlane.f32.xlu0 %v74_v22 }
 0x171   :  { %842 = vrcp.f32 %v142_v33 }
 0x175   :  { %v222_v39 = vld [vmem:[%s1363_s6 + $0x10] sm:$0xff] }
 0x176   :  { %372 = vst.msk [vmem:[%s1367_s10 + $0x10] sm:$0xff] %vm132_vm4, %v222_v39  ;;  %334 = vmatpush.msra.mxu1 %v222_v39 }
 0x177   :  { %v843_v34 = vpop.eup %842 }
 0x178   :  { %v1209_v36 = vmul.f32 %v843_v34, %v1194_v23  ;;  %v1228_v41 = vmul.f32 %v843_v34, %v1199_v24 }
 0x17a   :  { %v146_v38 = vsel %vm132_vm4, %v1209_v36, 0.0  ;;  %v149_v45 = vsel %vm132_vm4, %v1228_v41, 0.0 }
 0x17b   :  { %147 = vadd.xlane.f32.xlu2 %v146_v38  ;;  %150 = vadd.xlane.f32.xlu0 %v149_v45 }
 0x17d   :  { %v221_v42 = vld [vmem:[%s1363_s6 + $0x8] sm:$0xff] }
 0x17e   :  { %371 = vst.msk [vmem:[%s1367_s10 + $0x8] sm:$0xff] %vm132_vm4, %v221_v42  ;;  %335 = vmatpush.msra.mxu1 %v221_v42 }
 0x185   :  { %v220_v43 = vld [vmem:[%s1363_s6] sm:$0xff] }
 0x186   :  { %370 = vst.msk [vmem:[%s1367_s10] sm:$0xff] %vm132_vm4, %v220_v43  ;;  %336 = vmatpush.msra.mxu1 %v220_v43 }
 0x1c1   :  { %v307_v46 = vpop.xlane.xlu0 %306 }
 0x1c2   :  { %844 = vrcp.f32 %v307_v46 }
 0x1c7   :  { %v310_v47 = vpop.xlane.xlu1 %309 }
 0x1c8   :  { %v845_v48 = vpop.eup %844  ;;  %846 = vrcp.f32 %v310_v47 }
 0x1c9   :  { %v313_v49 = vmul.f32 %v845_v48, %v1127_v44 }
 0x1cb   :  { %783 = vmatmul.msk.f32.vlgmr.msra.gmra.mxu1 %vm292_vm3, %v313_v49 }
 0x1ce   :  { %v847_v55 = vpop.eup %846 }
 0x1cf   :  { %v314_v57 = vmul.f32 %v847_v55, %v1133_v53  ;;  %v552_v53 = vadd.s32 8, %v551_v54  ;;  %v91_v13 = vpop.xlane.xlu1 %90 }
 0x1d0   :  { %v92_v2 = vrot.slane %v91_v13, 4 }
 0x1d1   :  { %v590_v10 = vand.u32 15, %v552_v53  ;;  %v583_v19 = vadd.s32 8, %v552_v53 }
 0x1d2   :  { %v93_v6 = vadd.f32 %v92_v2, %v91_v13 }
 0x1d3   :  { %784 = vmatmul.msk.f32.gmra.mxu1 %vm292_vm3, %v314_v57  ;;  %v538_v44 = vpop.f32.mrf.mxu2  ;;  %vm659_vm3 = vcmp.ne.s32.totalorder %v552_v53, %v556_v60  ;;  %vm638_vm8 = vcmp.eq.s32.totalorder %v556_v60, %v590_v10  ;;  %v597_v27 = vand.u32 15, %v583_v19 }
 0x1d4   :  { %v1255_v20 = vsel %vm662_vm12, %v538_v44, -1e+30  ;;  %vm663_vm13 = vmand %vm561_vm9, %vm659_vm3  ;;  %v94_v8 = vrot.slane %v93_v6, 2  ;;  %v642_v40 = vsel %vm638_vm8, %v538_v44, 0.0 }
 0x1d5   :  { %v670_v52 = vsel %vm230_vm0, %v1255_v20, -inf  ;;  %vm665_vm9 = vmand %vm1265_vm15, %vm661_vm7  ;;  %v646_v32 = vsel %vm230_vm0, %v642_v40, 0.0 }
 0x1d6   :  { %671 = vmax.xlane.f32.xlu1 %v670_v52  ;;  %v95_v17 = vadd.f32 %v94_v8, %v93_v6 }
 0x1d8   :  { %v96_v22 = vrot.slane %v95_v17, 1 }
 0x1da   :  { %v97_v33 = vadd.f32 %v96_v22, %v95_v17  ;;  %v401_v22 = vmax.f32 %v1194_v23, 1e-30 }
 0x1db   :  { %v541_v3 = vpop.f32.mrf.mxu2 }
 0x1dc   :  { %v1260_v4 = vsel %vm663_vm13, %v541_v3, -1e+30 }
 0x1dd   :  { %v673_v5 = vsel %vm230_vm0, %v1260_v4, -inf }
 0x1de   :  { %674 = vmax.xlane.f32.xlu2 %v673_v5 }
 0x1e3   :  { %v544_v9 = vpop.f32.mrf.mxu2  ;;  %v76_v11 = vpop.xlane.xlu0 %75 }
 0x1e4   :  { %v1271_v12 = vsel %vm664_vm6, %v544_v9, -1e+30  ;;  %v1274_v14 = vsel %vm640_vm1, %v544_v9, 0.0  ;;  %v77_v15 = vrot.slane %v76_v11, 4  ;;  %vm639_vm1 = vcmp.eq.s32.totalorder %v556_v60, %v597_v27 }
 0x1e5   :  { %v676_v16 = vsel %vm230_vm0, %v1271_v12, -inf  ;;  %v643_v35 = vsel %vm639_vm1, %v541_v3, 0.0 }
 0x1e6   :  { %677 = vmax.xlane.f32.xlu0 %v676_v16  ;;  %v78_v18 = vadd.f32 %v77_v15, %v76_v11  ;;  %v649_v37 = vsel %vm230_vm0, %v643_v35, 0.0 }
 0x1e8   :  { %v79_v21 = vrot.slane %v78_v18, 2 }
 0x1ea   :  { %v80_v26 = vadd.f32 %v79_v21, %v78_v18 }
 0x1eb   :  { %v547_v25 = vpop.f32.mrf.mxu2 }
 0x1ec   :  { %v1281_v28 = vsel %vm641_vm11, %v547_v25, 0.0  ;;  %v1283_v29 = vsel %vm665_vm9, %v547_v25, -1e+30  ;;  %v81_v30 = vrot.slane %v80_v26, 1 }
 0x1ed   :  { %v679_v31 = vsel %vm230_vm0, %v1283_v29, -inf }
 0x1ee   :  { %680 = vmax.xlane.f32.xlu1 %v679_v31  ;;  %647 = vadd.xlane.f32.xlu0 %v646_v32  ;;  %v82_v34 = vadd.f32 %v81_v30, %v80_v26  ;;  %v148_v38 = vpop.xlane.xlu2 %147  ;;  %v151_v39 = vpop.xlane.xlu0 %150 }
 0x1ef   :  { %848 = vrcp.f32 %v148_v38  ;;  %vm157_vm10 = vweird.f32 %v148_v38  ;;  %v163_v49 = vand.u32 2147483648, %v148_v38  ;;  %v161_v50 = vand.u32 2147483647, %v148_v38 }
 0x1f0   :  { %807 = vpush %v82_v34  ;;  %850 = vrcp.f32 %v151_v39  ;;  %vm172_vm13 = vweird.f32 %v151_v39  ;;  %v178_v59 = vand.u32 2147483648, %v151_v39  ;;  %v176_v62 = vand.u32 2147483647, %v151_v39 }
 0x1f1   :  { %809 = vpush %v97_v33  ;;  %v164_v56 = vor.u32 1.1754944e-38, %v163_v49  ;;  %vm162_vm3 = vcmp.eq.f32.partialorder %v161_v50, 8.507059e+37 }
 0x1f2   :  { %v179_v51 = vor.u32 1.1754944e-38, %v178_v59  ;;  %vm177_vm5 = vcmp.eq.f32.partialorder %v176_v62, 8.507059e+37 }
 0x1f5   :  { %v849_v42 = vpop.eup %848 }
 0x1f6   :  { %650 = vadd.xlane.f32.xlu1 %v649_v37  ;;  %v153_v43 = vmul.f32 %v849_v42, %v148_v38  ;;  %v851_v46 = vpop.eup %850  ;;  %vm158_vm11 = vweird.f32 %v849_v42 }
 0x1f7   :  { %v168_v48 = vmul.f32 %v851_v46, %v151_v39  ;;  %vm159_vm12 = vmor %vm157_vm10, %vm158_vm11  ;;  %vm173_vm14 = vweird.f32 %v851_v46 }
 0x1f8   :  { %v154_v45 = vsub.f32 1.0, %v153_v43  ;;  %vm174_vm15 = vmor %vm172_vm13, %vm173_vm14 }
 0x1f9   :  { %v169_v54 = vsub.f32 1.0, %v168_v48 }
 0x1fa   :  { %v155_v47 = vmul.f32 %v849_v42, %v154_v45 }
 0x1fb   :  { %v170_v57 = vmul.f32 %v851_v46, %v169_v54 }
 0x1fc   :  { %v156_v55 = vadd.f32 %v849_v42, %v155_v47 }
 0x1fd   :  { %v171_v61 = vadd.f32 %v851_v46, %v170_v57 }
 0x1fe   :  { %v160_v58 = vsel %vm159_vm12, %v849_v42, %v156_v55  ;;  %v652_v55 = vsel %vm230_vm0, %v1274_v14, 0.0 }
 0x1ff   :  { %v165_v60 = vsel %vm162_vm3, %v164_v56, %v160_v58  ;;  %v175_v1 = vsel %vm174_vm15, %v851_v46, %v171_v61  ;;  %v402_v46 = vmax.f32 %v1199_v24, 1e-30  ;;  %v655_v24 = vsel %vm230_vm0, %v1281_v28, 0.0 }
 0x200   :  { %v166_v63 = vmul.f32 %v165_v60, %v1209_v36  ;;  %v180_v52 = vsel %vm177_vm5, %v179_v51, %v175_v1 }
 0x201   :  { %v181_v3 = vmul.f32 %v180_v52, %v1228_v41 }
 0x202   :  { %v344_v44 = vmul.f32 0.9, %v166_v63 }
 0x203   :  { %v345_v36 = vmul.f32 0.9, %v181_v3 }
 0x221   :  { %s1305_s20 = spop %807 }
 0x222   :  { %s810_s21 = spop %809 }
 0x223   :  { %v99_v9 = vstv %s810_s21 }
 0x224   :  { %852 = vrcp.f32 %v99_v9  ;;  %vm105_vm6 = vweird.f32 %v99_v9  ;;  %v111_v31 = vand.u32 2147483648, %v99_v9  ;;  %v109_v34 = vand.u32 2147483647, %v99_v9 }
 0x226   :  { %v112_v38 = vor.u32 1.1754944e-38, %v111_v31  ;;  %vm110_vm9 = vcmp.eq.f32.partialorder %v109_v34, 8.507059e+37  ;;  %v903_v31 = vmov 0.0  }
 0x22a   :  { %v853_v16 = vpop.eup %852 }
 0x22b   :  { %v101_v21 = vmul.f32 %v853_v16, %v99_v9  ;;  %vm106_vm7 = vweird.f32 %v853_v16 }
 0x22c   :  { %vm107_vm8 = vmor %vm105_vm6, %vm106_vm7 }
 0x248   :  { %v338_v53 = vpop.f32.mrf.mxu1 }
 0x249   :  { %v346_v13 = vmul.f32 0.1, %v338_v53  ;;  %v1307_v8 = vpop.xlane.xlu1 %671 }
 0x24a   :  { %v682_v41 = vsub.f32 %v1255_v20, %v1307_v8  ;;  %v102_v20 = vsub.f32 1.0, %v101_v21 }
 0x24b   :  { %v1296_v2 = vadd.f32 %v346_v13, %v344_v44 }
 0x24c   :  { %v686_v10 = vmul.f32 1.442695, %v682_v41  ;;  %v103_v30 = vmul.f32 %v853_v16, %v102_v20 }
 0x24d   :  { %387 = vst.msk [vmem:[%s386_s19] sm:$0xff] %vm132_vm4, %v1296_v2  ;;  %v389_v58 = vsel %vm132_vm4, %v1296_v2, -inf }
 0x24e   :  { %854 = vpow2.f32 %v686_v10  ;;  %v104_v33 = vadd.f32 %v853_v16, %v103_v30 }
 0x250   :  { %v341_v5 = vpop.f32.mrf.mxu1  ;;  %v108_v45 = vsel %vm107_vm8, %v853_v16, %v104_v33 }
 0x251   :  { %v347_v6 = vmul.f32 0.1, %v341_v5  ;;  %v1311_v11 = vpop.xlane.xlu2 %674 }
 0x252   :  { %v683_v15 = vsub.f32 %v1260_v4, %v1311_v11 }
 0x253   :  { %v1301_v7 = vadd.f32 %v347_v6, %v345_v36 }
 0x254   :  { %v855_v17 = vpop.eup %854  ;;  %v688_v18 = vmul.f32 1.442695, %v683_v15 }
 0x255   :  { %388 = vst.msk [vmem:[%s386_s19 + $0x8] sm:$0xff] %vm132_vm4, %v1301_v7  ;;  %v694_v19 = vsel %vm230_vm0, %v855_v17, 0.0  ;;  %v392_v42 = vsel %vm132_vm4, %v1301_v7, -inf }
 0x256   :  { %856 = vpow2.f32 %v688_v18  ;;  %695 = vadd.xlane.f32.xlu2 %v694_v19 }
 0x257   :  { %858 = vlog2.f32 %v401_v22 }
 0x259   :  { %v1317_v40 = vpop.xlane.xlu0 %677 }
 0x25a   :  { %v684_v25 = vsub.f32 %v1271_v12, %v1317_v40 }
 0x25c   :  { %v857_v26 = vpop.eup %856  ;;  %v690_v27 = vmul.f32 1.442695, %v684_v25 }
 0x25d   :  { %v697_v4 = vsel %vm230_vm0, %v857_v26, 0.0  ;;  %v859_v23 = vpop.eup %858 }
 0x25e   :  { %860 = vpow2.f32 %v690_v27  ;;  %698 = vadd.xlane.f32.xlu0 %v697_v4  ;;  %v404_v43 = vmul.f32 0.6931472, %v859_v23 }
 0x260   :  { %v407_v47 = vmul.f32 %v404_v43, %v1296_v2 }
 0x261   :  { %v1322_v32 = vpop.xlane.xlu1 %680  ;;  %v648_v51 = vpop.xlane.xlu0 %647 }
 0x262   :  { %v685_v35 = vsub.f32 %v1283_v29, %v1322_v32  ;;  %v113_v29 = vsel %vm110_vm9, %v112_v38, %v108_v45  ;;  %v409_v54 = vsel %vm132_vm4, %v407_v47, 0.0 }
 0x263   :  { %v114_v49 = vmul.f32 %v113_v29, %v1146_v0 }
 0x264   :  { %v861_v12 = vpop.eup %860  ;;  %v692_v37 = vmul.f32 1.442695, %v685_v35 }
 0x265   :  { %v700_v39 = vsel %vm230_vm0, %v861_v12, 0.0  ;;  %v115_v56 = vmax.f32 %v114_v49, 1e-30 }
 0x266   :  { %862 = vpow2.f32 %v692_v37  ;;  %701 = vadd.xlane.f32.xlu1 %v700_v39  ;;  %393 = vmax.xlane.f32.xlu0 %v392_v42 }
 0x267   :  { %864 = vlog2.f32 %v402_v46 }
 0x268   :  { %866 = vlog2.f32 %v115_v56 }
 0x269   :  { %v651_v1 = vpop.xlane.xlu1 %650 }
 0x26c   :  { %v863_v48 = vpop.eup %862 }
 0x26d   :  { %v703_v50 = vsel %vm230_vm0, %v863_v48, 0.0  ;;  %v865_v57 = vpop.eup %864 }
 0x26e   :  { %704 = vadd.xlane.f32.xlu2 %v703_v50  ;;  %410 = vadd.xlane.f32.xlu1 %v409_v54  ;;  %v406_v0 = vmul.f32 0.6931472, %v865_v57  ;;  %v867_v60 = vpop.eup %866 }
 0x26f   :  { %653 = vadd.xlane.f32.xlu0 %v652_v55  ;;  %v117_v62 = vmul.f32 0.6931472, %v867_v60 }
 0x270   :  { %v408_v59 = vmul.f32 %v406_v0, %v1301_v7 }
 0x271   :  { %v118_v14 = vmul.f32 %v117_v62, %v114_v49 }
 0x272   :  { %v412_v61 = vsel %vm132_vm4, %v408_v59, 0.0 }
 0x273   :  { %v119_v63 = vsel %vm43_vm2, %v118_v14, 0.0 }
 0x276   :  { %656 = vadd.xlane.f32.xlu1 %v655_v24  ;;  %390 = vmax.xlane.f32.xlu2 %v389_v58 }
 0x27e   :  { %413 = vadd.xlane.f32.xlu2 %v412_v61 }
 0x286   :  { %120 = vadd.xlane.f32.xlu2 %v119_v63 }
 0x2c9   :  { %v696_v44 = vpop.xlane.xlu2 %695 }
 0x2d1   :  { %v699_v28 = vpop.xlane.xlu0 %698 }
 0x2d2   :  { %868 = vlog2.f32 %v699_v28 }
 0x2d3   :  { %870 = vlog2.f32 %v696_v44  ;;  %v84_v44 = vstv %s1305_s20 }
 0x2d8   :  { %v869_v52 = vpop.eup %868 }
 0x2d9   :  { %v702_v53 = vpop.xlane.xlu1 %701  ;;  %v871_v13 = vpop.eup %870  ;;  %v709_v3 = vmul.f32 0.6931472, %v869_v52  ;;  %v85_v52 = vadd.f32 2.0794415, %v84_v44 }
 0x2da   :  { %872 = vlog2.f32 %v702_v53  ;;  %v394_v2 = vpop.xlane.xlu0 %393  ;;  %v707_v36 = vmul.f32 0.6931472, %v871_v13 }
 0x2db   :  { %v715_v6 = vadd.f32 %v709_v3, %v1311_v11  ;;  %vm396_vm4 = vcmp.ge.f32.partialorder %v394_v2, 0.2 }
 0x2dc   :  { %v714_v10 = vadd.f32 %v707_v36, %v1307_v8  ;;  %v786_v39 = vsel %vm396_vm4, 1.0, %v903_v31 }
 0x2dd   :  { %v719_v16 = vsub.f32 %v715_v6, %v651_v1 }
 0x2de   :  { %v718_v18 = vsub.f32 %v714_v10, %v648_v51 }
 0x2df   :  { %v723_v25 = vsel %vm43_vm2, %v719_v16, 0.0 }
 0x2e0   :  { %v873_v5 = vpop.eup %872  ;;  %v722_v27 = vsel %vm43_vm2, %v718_v18, 0.0 }
 0x2e1   :  { %v711_v7 = vmul.f32 0.6931472, %v873_v5  ;;  %v705_v9 = vpop.xlane.xlu2 %704  ;;  %v411_v41 = vpop.xlane.xlu1 %410  ;;  %v724_v8 = vadd.f32 %v723_v25, %v722_v27 }
 0x2e2   :  { %874 = vlog2.f32 %v705_v9  ;;  %v654_v17 = vpop.xlane.xlu0 %653  ;;  %v415_v34 = vsub.f32 0.0, %v411_v41 }
 0x2e3   :  { %v716_v15 = vadd.f32 %v711_v7, %v1317_v40 }
 0x2e5   :  { %v720_v19 = vsub.f32 %v716_v15, %v654_v17 }
 0x2e7   :  { %v725_v26 = vsel %vm43_vm2, %v720_v19, 0.0 }
 0x2e8   :  { %v875_v21 = vpop.eup %874  ;;  %v726_v40 = vadd.f32 %v725_v26, %v724_v8 }
 0x2e9   :  { %v713_v22 = vmul.f32 0.6931472, %v875_v21  ;;  %v391_v20 = vpop.xlane.xlu2 %390  ;;  %v657_v4 = vpop.xlane.xlu1 %656 }
 0x2ea   :  { %vm395_vm0 = vcmp.ge.f32.partialorder %v391_v20, 0.2 }
 0x2eb   :  { %v717_v11 = vadd.f32 %v713_v22, %v1322_v32  ;;  %v785_v23 = vsel %vm395_vm0, 1.0, %v903_v31 }
 0x2ec   :  { %v417_v37 = vmul.f32 %v785_v23, %v415_v34 }
 0x2ed   :  { %v721_v30 = vsub.f32 %v717_v11, %v657_v4 }
 0x2ee   :  { %v419_v42 = vsel %vm43_vm2, %v417_v37, 0.0 }
 0x2ef   :  { %v727_v33 = vsel %vm43_vm2, %v721_v30, 0.0 }
 0x2f0   :  { %v728_v35 = vadd.f32 %v727_v33, %v726_v40 }
 0x2f1   :  { %v414_v12 = vpop.xlane.xlu2 %413 }
 0x2f2   :  { %v416_v38 = vsub.f32 0.0, %v414_v12  ;;  %729 = vadd.xlane.f32.xlu1 %v728_v35 }
 0x2f4   :  { %v418_v32 = vmul.f32 %v786_v39, %v416_v38 }
 0x2f6   :  { %v420_v43 = vsel %vm43_vm2, %v418_v32, 0.0  ;;  %vm743_vm2 = vcmask 0  }
 0x2f7   :  { %v421_v45 = vadd.f32 %v420_v43, %v419_v42 }
 0x2f9   :  { %422 = vadd.xlane.f32.xlu0 %v421_v45  ;;  %v121_v46 = vpop.xlane.xlu2 %120 }
 0x2fa   :  { %v122_v47 = vrot.slane %v121_v46, 4 }
 0x2fc   :  { %v123_v29 = vadd.f32 %v122_v47, %v121_v46 }
 0x2fe   :  { %v124_v48 = vrot.slane %v123_v29, 2 }
 0x300   :  { %v125_v49 = vadd.f32 %v124_v48, %v123_v29 }
 0x302   :  { %v126_v50 = vrot.slane %v125_v49, 1 }
 0x304   :  { %v127_v54 = vadd.f32 %v126_v50, %v125_v49 }
 0x306   :  { %811 = vpush %v127_v54 }
 0x337   :  { %s812_s7 = spop %811 }
 0x338   :  { %v129_v28 = vstv %s812_s7 }
 0x339   :  { %v130_v53 = vadd.f32 2.0794415, %v129_v28 }
 0x33b   :  { %v131_v36 = vadd.f32 %v130_v53, %v85_v52 }
 0x365   :  { %v730_v55 = vpop.xlane.xlu1 %729 }
 0x366   :  { %v731_v56 = vrot.slane %v730_v55, 4 }
 0x368   :  { %v732_v57 = vadd.f32 %v731_v56, %v730_v55 }
 0x36a   :  { %v733_v24 = vrot.slane %v732_v57, 2 }
 0x36c   :  { %v423_v58 = vpop.xlane.xlu0 %422  ;;  %v734_v60 = vadd.f32 %v733_v24, %v732_v57 }
 0x36d   :  { %v424_v0 = vrot.slane %v423_v58, 4 }
 0x36e   :  { %v735_v14 = vrot.slane %v734_v60, 1 }
 0x36f   :  { %v425_v59 = vadd.f32 %v424_v0, %v423_v58 }
 0x370   :  { %v736_v1 = vadd.f32 %v735_v14, %v734_v60 }
 0x371   :  { %v426_v61 = vrot.slane %v425_v59, 2 }
 0x373   :  { %v427_v62 = vadd.f32 %v426_v61, %v425_v59 }
 0x375   :  { %v428_v63 = vrot.slane %v427_v62, 1 }
 0x377   :  { %v429_v51 = vadd.f32 %v428_v63, %v427_v62 }
 0x379   :  { %813 = vpush %v429_v51 }
 0x37a   :  { %815 = vpush %v736_v1 }
 0x3aa   :  { %s814_s10 = spop %813 }
 0x3ab   :  { %v431_v13 = vstv %s814_s10  ;;  %s816_s4 = spop %815 }
 0x3ac   :  { %v432_v2 = vmul.f32 0.0625, %v431_v13  ;;  %v738_v3 = vstv %s816_s4 }
 0x3ad   :  { %v739_v5 = vmul.f32 0.03125, %v738_v3 }
 0x3ae   :  { %v741_v6 = vmul.f32 10.0, %v432_v2 }
 0x3af   :  { %v740_v7 = vadd.f32 %v739_v5, %v131_v36 }
 0x3b1   :  { %v742_v9 = vadd.f32 %v741_v6, %v740_v7 }
 0x3b3   :  { %744 = vst.msk [vmem:[#allocation4] sm:$0x1] %vm743_vm2, %v742_v9 }
 0x3b4   :  { %755 = dma.vmem_to_hbm [thread:$0]  %s751_s2, 16, %s753_s3, [#allocation5]  }
 0x3b5   :  { %900 = dma.done.wait [#allocation5], 16  }
 0x3b6   :  { %901 = vsyncadd [#allocation5], 4294967280 }
 0x3b7   :  { %768 = vsyncpa [#allocation5], 1 }

</bundles_post_ra>
